<compile_context>
chip_gen: v7x
topology: tpu7x:2x2x1
jax: 0.10.0
libtpu: 0.0.40
codegen_flags: <defaults>
</compile_context>

<pallas_src>
import jax
import jax.numpy as jnp
from jax.experimental import pallas as pl
from jax.experimental.pallas import tpu as pltpu


# ----------------------------- Pallas kernels ------------------------------------- #

def _conv_stats_kernel(p_ref, w_ref, act_ref, stats_ref):
    # p_ref:     (TN, 9*Cin)     bf16 im2col rows for this tile
    # w_ref:     (9*Cin, 4*Cout) bf16 effective sub-pixel weights
    # act_ref:   (TN, 4*Cout)    f32 conv activation (pre-BN, bias omitted)
    # stats_ref: (1, 2, 4*Cout)  f32 per-tile [sum, sum_of_squares]
    acc = jnp.dot(p_ref[...], w_ref[...], preferred_element_type=jnp.float32)
    act_ref[...] = acc
    # Per-tile partial BN statistics (padded rows are exactly zero -> contribute 0).
    stats_ref[0, 0:1, :] = jnp.sum(acc, axis=0, keepdims=True)
    stats_ref[0, 1:2, :] = jnp.sum(acc * acc, axis=0, keepdims=True)


def _bn_relu_kernel(act_ref, scale_ref, shift_ref, o_ref):
    # y = act * (gamma * invstd) + (beta - mean * gamma * invstd), then ReLU (f32 VPU).
    o_ref[...] = jnp.maximum(act_ref[...] * scale_ref[...] + shift_ref[...], 0.0)


# ------------------------------- wrapper ------------------------------------------ #

def up_conv_forward(x_nchw, weight, bias, gamma, beta, *, tile_n=256, eps=1e-5):
    """x_nchw: (B, Cin, H, W); weight: (Cout, Cin, 3, 3) PyTorch OIHW.  Returns NCHW."""
    B, Cin, H, W = x_nchw.shape
    Cout = weight.shape[0]
    K = 9 * Cin
    C4 = 4 * Cout
    H2, W2 = 2 * H, 2 * W
    N = B * H * W                      # original-resolution positions (1/4 of output)

    # --- glue: NHWC, zero-pad 1, 3x3 im2col at ORIGINAL resolution -----------------
    xh = jnp.transpose(x_nchw, (0, 2, 3, 1))                    # (B, H, W, Cin)
    xp = jnp.pad(xh, ((0, 0), (1, 1), (1, 1), (0, 0)))
    cols = [xp[:, kh:kh + H, kw:kw + W, :] for kh in range(3) for kw in range(3)]
    patches = jnp.concatenate(cols, axis=-1).reshape(N, K)      # (N, 9*Cin)
    # TODO(synk): patches is still a 9x-materialized im2col in HBM; a halo-tiled
    # in-kernel gather (pl.ANY + pltpu.make_async_copy) would cut HBM reads to ~1x.

    nt = int(pl.cdiv(N, tile_n))
    n_pad = nt * tile_n
    if n_pad != N:
        # Zero rows: with bias omitted they contribute exactly 0 to sum / sum_sq.
        patches = jnp.pad(patches, ((0, n_pad - N), (0, 0)))
    patches = patches.astype(jnp.bfloat16)

    # --- effective sub-pixel weights (9*Cin, 4*Cout): phase (a,b) output lands at
    #     upsampled position (2i+a, 2j+b); built once at trace time (tiny). ----------
    w_hw = jnp.transpose(weight, (2, 3, 1, 0)).astype(jnp.float32)  # (3,3,Cin,Cout)
    w_eff = jnp.zeros((3, 3, Cin, 2, 2, Cout), jnp.float32)
    for a in range(2):
        for uh in range(3):
            kh = (a - 1 + uh) // 2 + 1          # original-res row tap for this phase
            for b in range(2):
                for uw in range(3):
                    kw = (b - 1 + uw) // 2 + 1  # original-res col tap
                    w_eff = w_eff.at[kh, kw, :, a, b, :].add(w_hw[uh, uw])
    w_eff = w_eff.reshape(K, C4).astype(jnp.bfloat16)

    # --- pass 1: tiled conv (single MXU matmul) + per-tile partial BN stats ----------
    act, stats = pl.pallas_call(
        _conv_stats_kernel,
        out_shape=(jax.ShapeDtypeStruct((n_pad, C4), jnp.float32),
                   jax.ShapeDtypeStruct((nt, 2, C4), jnp.float32)),
        grid=(nt,),
        in_specs=[pl.BlockSpec((tile_n, K), lambda i: (i, 0)),
                  pl.BlockSpec((K, C4), lambda i: (0, 0))],
        out_specs=(pl.BlockSpec((tile_n, C4), lambda i: (i, 0)),
                   pl.BlockSpec((1, 2, C4), lambda i: (i, 0, 0))),
        compiler_params=pltpu.CompilerParams(dimension_semantics=("parallel",)),
    )(patches, w_eff)

    # --- tiny global reduction + BN parameter folding (per real Cout channel) -------
    # Channel o's samples live in 4 phase columns -> count = 4*N = B*H2*W2.
    s = jnp.sum(stats, axis=0).reshape(2, 4, Cout).sum(axis=1)   # (2, Cout)
    cnt = jnp.float32(4 * N)
    mean = s[0] / cnt
    var = s[1] / cnt - mean * mean                 # biased variance (PyTorch train BN)
    scale_c = gamma.astype(jnp.float32) * jax.lax.rsqrt(var + eps)
    shift_c = beta.astype(jnp.float32) - mean * scale_c
    # NOTE: conv bias is omitted everywhere — it cancels exactly under BN centering.
    scale = jnp.tile(scale_c, 4).reshape(1, C4)
    shift = jnp.tile(shift_c, 4).reshape(1, C4)

    # --- pass 2: tiled normalize + affine + ReLU (f32 epilogue) ----------------------
    rows = pl.pallas_call(
        _bn_relu_kernel,
        out_shape=jax.ShapeDtypeStruct((n_pad, C4), jnp.float32),
        grid=(nt,),
        in_specs=[pl.BlockSpec((tile_n, C4), lambda i: (i, 0)),
                  pl.BlockSpec((1, C4), lambda i: (0, 0)),
                  pl.BlockSpec((1, C4), lambda i: (0, 0))],
        out_specs=pl.BlockSpec((tile_n, C4), lambda i: (i, 0)),
        compiler_params=pltpu.CompilerParams(dimension_semantics=("parallel",)),
    )(act, scale, shift)

    # rows: (N, 4*Cout) with column index (a*2+b)*Cout + o -> scatter phases back to
    # upsampled positions (2i+a, 2j+b) via reshape/transpose (pure glue).
    out = rows[:N].reshape(B, H, W, 2, 2, Cout)
    out = jnp.transpose(out, (0, 5, 1, 3, 2, 4)).reshape(B, Cout, H2, W2)
    return out


# ------------------------------- reference ----------------------------------------- #

def up_conv_reference(x, weight, bias, gamma, beta):
    """Pure-JAX f32 reference of the PyTorch forward (training-mode BN)."""
    x = jnp.repeat(jnp.repeat(x, 2, axis=2), 2, axis=3)
    y = jax.lax.conv_general_dilated(
        x, weight, window_strides=(1, 1), padding=((1, 1), (1, 1)),
        dimension_numbers=("NCHW", "OIHW", "NCHW"))
    y = y + bias[None, :, None, None]
    mean = jnp.mean(y, axis=(0, 2, 3), keepdims=True)
    var = jnp.mean((y - mean) ** 2, axis=(0, 2, 3), keepdims=True)
    y = (y - mean) * jax.lax.rsqrt(var + 1e-5)
    y = y * gamma[None, :, None, None] + beta[None, :, None, None]
    return jnp.maximum(y, 0.0)


if __name__ == "__main__":
    B, Cin, Cout, H, W = 2, 4, 8, 16, 16

    key = jax.random.PRNGKey(0)
    kx, kw, kb, kg, kbe = jax.random.split(key, 5)

    x = jax.random.normal(kx, (B, Cin, H, W), dtype=jnp.float32)
    weight = 0.1 * jax.random.normal(kw, (Cout, Cin, 3, 3), dtype=jnp.float32)
    bias = 0.1 * jax.random.normal(kb, (Cout,), dtype=jnp.float32)
    gamma = 1.0 + 0.1 * jax.random.normal(kg, (Cout,), dtype=jnp.float32)
    beta = 0.1 * jax.random.normal(kbe, (Cout,), dtype=jnp.float32)

    out = jax.block_until_ready(up_conv_forward(x, weight, bias, gamma, beta))
    ref = jax.block_until_ready(up_conv_reference(x, weight, bias, gamma, beta))

    assert out.shape == (B, Cout, 2 * H, 2 * W), out.shape
    max_err = float(jnp.max(jnp.abs(out - ref)))
    # bf16 MXU inputs with f32 accumulation -> bf16-level tolerance vs the f32 reference.
    assert jnp.allclose(out, ref, rtol=2e-2, atol=3e-2), max_err

    print("KERNEL_OK")
</pallas_src>

<mosaic_0001>
module attributes {stable_mosaic.version = 11 : i64} {
  func.func @_conv_stats_kernel(%arg0: i32, %arg1: memref<256x36xbf16, #tpu.memory_space<vmem>>, %arg2: memref<36x32xbf16, #tpu.memory_space<vmem>>, %arg3: memref<256x32xf32, #tpu.memory_space<vmem>>, %arg4: memref<1x2x32xf32, #tpu.memory_space<vmem>>) attributes {dimension_semantics = [#tpu.dimension_semantics<parallel>], iteration_bounds = array<i64: 2>, scalar_prefetch = 0 : i64, scratch_operands = 0 : i64, tpu.core_type = #tpu.core_type<tc>, window_params = [{transform_indices = @transform_0, window_bounds = array<i64: 256, 36>}, {pipeline_mode = #tpu.pipeline_mode<synchronous>, transform_indices = @transform_1, window_bounds = array<i64: 36, 32>}, {transform_indices = @transform_2, window_bounds = array<i64: 256, 32>}, {transform_indices = @transform_3, window_bounds = array<i64: 1, 2, 32>}]} {
    %c0 = arith.constant 0 : index
    %c0_0 = arith.constant 0 : index
    %0 = vector.load %arg1[%c0, %c0_0] : memref<256x36xbf16, #tpu.memory_space<vmem>>, vector<256x36xbf16>
    %c0_1 = arith.constant 0 : index
    %c0_2 = arith.constant 0 : index
    %1 = vector.load %arg2[%c0_1, %c0_2] : memref<36x32xbf16, #tpu.memory_space<vmem>>, vector<36x32xbf16>
    %cst = arith.constant dense<0.000000e+00> : vector<256x32xf32>
    %2 = tpu.matmul %0, %1, %cst {dimension_numbers = #tpu.dot_dimension_numbers<[1], [0], [0], [1], [0, 0, 1, 1], [], []>} : vector<256x36xbf16>, vector<36x32xbf16>, vector<256x32xf32> -> vector<256x32xf32>
    %c0_3 = arith.constant 0 : index
    %c0_4 = arith.constant 0 : index
    %3 = vector.load %arg3[%c0_3, %c0_4] : memref<256x32xf32, #tpu.memory_space<vmem>>, vector<256x32xf32>
    tpu.vector_store %arg3[%c0_3, %c0_4], %2 {strides = array<i32>} : memref<256x32xf32, #tpu.memory_space<vmem>>, vector<256x32xf32>,
    %cst_5 = arith.constant dense<0.000000e+00> : vector<32xf32>
    %4 = vector.multi_reduction <add>, %2, %cst_5 [0] : vector<256x32xf32> to vector<32xf32>
    %5 = vector.shape_cast %4 : vector<32xf32> to vector<1x32xf32>
    %c0_6 = arith.constant 0 : index
    %c0_7 = arith.constant 0 : index
    %c0_8 = arith.constant 0 : index
    %6 = vector.load %arg4[%c0_6, %c0_7, %c0_8] : memref<1x2x32xf32, #tpu.memory_space<vmem>>, vector<1x1x32xf32>
    %7 = vector.shape_cast %6 : vector<1x1x32xf32> to vector<1x32xf32>
    %8 = vector.shape_cast %5 : vector<1x32xf32> to vector<1x1x32xf32>
    tpu.vector_store %arg4[%c0_6, %c0_7, %c0_8], %8 {strides = array<i32>} : memref<1x2x32xf32, #tpu.memory_space<vmem>>, vector<1x1x32xf32>,
    %9 = arith.mulf %2, %2 : vector<256x32xf32>
    %cst_9 = arith.constant dense<0.000000e+00> : vector<32xf32>
    %10 = vector.multi_reduction <add>, %9, %cst_9 [0] : vector<256x32xf32> to vector<32xf32>
    %11 = vector.shape_cast %10 : vector<32xf32> to vector<1x32xf32>
    %c0_10 = arith.constant 0 : index
    %c1 = arith.constant 1 : index
    %c0_11 = arith.constant 0 : index
    %12 = vector.load %arg4[%c0_10, %c1, %c0_11] : memref<1x2x32xf32, #tpu.memory_space<vmem>>, vector<1x1x32xf32>
    %13 = vector.shape_cast %12 : vector<1x1x32xf32> to vector<1x32xf32>
    %14 = vector.shape_cast %11 : vector<1x32xf32> to vector<1x1x32xf32>
    tpu.vector_store %arg4[%c0_10, %c1, %c0_11], %14 {strides = array<i32>} : memref<1x2x32xf32, #tpu.memory_space<vmem>>, vector<1x1x32xf32>,
    return
  }
  func.func @transform_0(%arg0: i32) -> (i32, i32) {
    %c0_i32 = arith.constant 0 : i32
    %c0_i32_0 = arith.constant 0 : i32
    return %arg0, %c0_i32 : i32, i32
  }
  func.func @transform_1(%arg0: i32) -> (i32, i32) {
    %c0_i32 = arith.constant 0 : i32
    %c0_i32_0 = arith.constant 0 : i32
    %c0_i32_1 = arith.constant 0 : i32
    return %c0_i32, %c0_i32_0 : i32, i32
  }
  func.func @transform_2(%arg0: i32) -> (i32, i32) {
    %c0_i32 = arith.constant 0 : i32
    %c0_i32_0 = arith.constant 0 : i32
    return %arg0, %c0_i32 : i32, i32
  }
  func.func @transform_3(%arg0: i32) -> (i32, i32, i32) {
    %c0_i32 = arith.constant 0 : i32
    %c0_i32_0 = arith.constant 0 : i32
    %c0_i32_1 = arith.constant 0 : i32
    return %arg0, %c0_i32, %c0_i32_0 : i32, i32, i32
  }
}

</mosaic_0001>

<bundles_post_ra>
// kernel: tpu_custom_call.1
= control target key start
LH: loop header
LB: loop body
LE: loop exit
PB: predicated region body
PF: predicated region fallthrough
CT: control target
= control target key end

     0   :  { %9 = vsyncpa [#allocation3], 0  ;;  %s1479_s0 = inlined_call_operand.vmem [shape: bf16[512,36], index: 0, kind: input, shape index: {}]   ;;  %s1480_s1 = inlined_call_operand.vmem [shape: bf16[36,32], index: 1, kind: input, shape index: {}]   ;;  %s1481_s2 = inlined_call_operand.vmem [shape: f32[512,32], index: 2, kind: output, shape index: {0}]   ;;  %s1482_s3 = inlined_call_operand.hbm [shape: f32[2,2,32], index: 3, kind: output, shape index: {1}]  }
   0x1   :  { %11 = vsyncpa [#allocation3 + $0x1], 0  ;;  %s1101_s12 = smov 0   ;;  %s1103_s13 = smov 0  }
   0x2   :  { %s1105_s14 = smov 0   ;;  %s1107_s15 = smov 0  }
   0x3 LB: > { %s844_s16 = sadd.s32 4294967295, %s1078_s15   ;;  %s845_s17 = sadd.s32 4294967294, %s1078_s15   ;;  %s1078_s15 = sphi %s1107_s15, %s1488_s15   ;;  %s1074_s14 = sphi %s1105_s14, %s1487_s14   ;;  %s1070_s13 = sphi %s1103_s13, %s1486_s13   ;;  %s1066_s12 = sphi %s1101_s12, %s1485_s12  }
   0x4   : > { %s1124_s18 = sadd.s32 1, %s1078_s15   ;;  %s97_s19 = sadd.s32 1, %s1074_s14 }
   0x5   : > { %s94_s20 = ssub.s32 %s1078_s15, %s1124_s18  ;;  %p107_p0 = scmp.ne.s32.totalorder %s1074_s14, %s1070_s13 }
   0x6   : > { %p95_p1 = scmp.eq.s32.totalorder %s94_s20, 0  ;;  %p108_p2 = scmp.eq.s32.totalorder %s844_s16, 1 }
   0x7   : > { %p113_p3 = scmp.ne.s32.totalorder %s1070_s13, %s1066_s12  ;;  %p114_p4 = scmp.eq.s32.totalorder %s845_s17, 1 }
   0x8   : > { %s1134_s21 = scalar_select %p95_p1, %s1074_s14, %s97_s19  }
   0x9   : > { %p1136_p5 = por %p108_p2, %p107_p0  ;;  %p1140_p6 = por %p114_p4, %p113_p3 }
   0xa   : > { %p848_p7 = scmp.ge.s32.totalorder %s1078_s15, 1  ;;  %p144_p8 = scmp.lt.s32.totalorder %s1078_s15, 3 }
   0xc   : > { %p145_p9 = pnand %p848_p7, %p144_p8 }
   0xd   : > { %v997_v0 = vld [vmem:[%s1480_s1] sm:$0xff] (!%p145_p9)   ;;  %v998_v1 = vld [vmem:[%s1480_s1 + $0x8] sm:$0xff] (!%p145_p9)   ;;  %s1152_s28 = sshll.u32 (!%p145_p9), %s844_s16, 5  ;;  %v999_v2 = vld [vmem:[%s1480_s1 + $0x10] ss:$0 sps:$4 sm:$0x33] (!%p145_p9)  }
   0xe   : > { %148 = sbr.rel (%p145_p9) target bundleno = 333 (0x14d), region = 28  ;;  %912 = vmatprep.subr.bf16.mxu0 (!%p145_p9), %v997_v0  ;;  %p174_p10 = scmp.lt.s32.totalorder (!%p145_p9), %s1152_s28, 63  ;;  %950 = vmatprep.subr.bf16.mxu1 (!%p145_p9), %v997_v0  ;;  %vm367_vm0 = vcmask (!%p145_p9), 1041408   ;;  %vm318_vm1 = vcmask (!%p145_p9), 293888   ;;  %vm532_vm2 = vcmask (!%p145_p9), 261120   ;;  %vm634_vm3 = vcmask (!%p145_p9), 253952  }
   0xf   : > { %913 = vmatpush3.bf16.msra.mxu0 (!%p145_p9), %v997_v0  ;;  %953 = vmatpush3.bf16.msra.mxu1 (!%p145_p9), %v997_v0  ;;  %v369_v3 = vsel (!%p145_p9), %vm367_vm0, %v999_v2, 0  ;;  %s170_s17 = sand.u32 (!%p145_p9), 1, %s1070_s13   ;;  %s1437_s27 = scalar_lea.hbm (!%p145_p9), %s1482_s3, %s1152_s28 }
  0x10   : > { %914 = vmatprep.subr.bf16.mxu0 (!%p145_p9), %v998_v1  ;;  %951 = vmatprep.subr.bf16.mxu1 (!%p145_p9), %v998_v1  ;;  %s849_s19 = sshll.u32 (!%p145_p9), %s170_s17, 1  ;;  %s744_s29 = scalar_lea.sflag (!%p145_p9), [#allocation3], %s170_s17 }
  0x11   : > { %s172_s20 = scalar_lea.vmem (!%p145_p9), [#allocation2], %s849_s19 }
  0x12   : > { %s761_s24 = sshll.u32 (!%p145_p9), %s172_s20, 4  ;;  %s1439_s24 = int_to_ptr.vmem [resolvable:$true] %s761_s24 }
  0x13   : > { %915 = vmatpush3.bf16.msra.mxu0 (!%p145_p9), %v998_v1  ;;  %954 = vmatpush3.bf16.msra.mxu1 (!%p145_p9), %v998_v1  ;;  %s1016_s30 = scalar_lea.vmem (!%p145_p9), %s1439_s24, 32 }
  0x14   : > { %956 = vmatprep.subr.msk.bf16.mxu0 (!%p145_p9), %vm367_vm0, %v999_v2  ;;  %957 = vmatprep.subr.msk.bf16.mxu1 (!%p145_p9), %vm367_vm0, %v999_v2  ;;  %p1017_p11 = scmp.ne.s32.totalorder (!%p145_p9), %s1439_s24, %s1016_s30 }
  0x15   : > { %s1159_s4 = scalar_select %p174_p10, %s1152_s28, 63 }
  0x16   : > { %p1018_p12 = pnand %p1017_p11, %p1136_p5 }
  0x17   : > { %s851_s5 = sshll.u32 %s1159_s4, 2  ;;  %917 = vmatpush3.bf16.msra.mxu0 %v369_v3  ;;  %955 = vmatpush3.bf16.msra.mxu1 %v369_v3  ;;  %s853_s9 = sshll.u32 %s1159_s4, 3 }
  0x18   : > { %s1165_s8 = scalar_lea.vmem %s1479_s0, %s851_s5  ;;  %s1203_s16 = scalar_lea.vmem %s1481_s2, %s853_s9 }
  0x19   : > { %v1000_v4 = vld [vmem:[%s1165_s8] sm:$0xff]   ;;  %v1001_v5 = vld [vmem:[%s1165_s8 + $0x8] sm:$0xff]   ;;  %v1002_v6 = vld [vmem:[%s1165_s8 + $0x10] sm:$0xff]   ;;  %p1019_p13 = pneg %p1018_p12  ;;  %s1080_s4 = smov [#allocation2]  }
  0x1a   : > { %918 = vmatprep.mubr.msk.bf16.mxu0 %vm318_vm1, %v1000_v4  ;;  %v1003_v7 = vld [vmem:[%s1165_s8 + $0x18] sm:$0xff]   ;;  %v1008_v8 = vld [vmem:[%s1165_s8 + $0x40] sm:$0xff]   ;;  %v1009_v9 = vld [vmem:[%s1165_s8 + $0x48] sm:$0xff]   ;;  %s1020_s5 = sshll.u32 %s1080_s4, 4  ;;  %s1021_s5 = int_to_ptr.vmem [resolvable:$false] %s1020_s5 }
  0x1b   : > { %919 = vmatmul.mubr.msk.bf16.vlgmr.msra.gmra.mrb[0].mxu0 %vm318_vm1, %v1001_v5  ;;  %934 = vmatprep.mubr.msk.bf16.mxu1 %vm318_vm1, %v1008_v8  ;;  %v1010_v10 = vld [vmem:[%s1165_s8 + $0x50] sm:$0xff]   ;;  %v1004_v11 = vld [vmem:[%s1165_s8 + $0x20] sm:$0xff]   ;;  %v1011_v12 = vld [vmem:[%s1165_s8 + $0x58] sm:$0xff]   ;;  %s1022_s6 = scalar_lea.vmem %s1021_s5, 64  ;;  %p1023_p0 = scmp.lt.s32.totalorder %s1439_s24, %s1021_s5 }
  0x1c   : > { %922 = vmatprep.mubr.msk.bf16.mxu0 %vm318_vm1, %v1002_v6  ;;  %935 = vmatmul.mubr.msk.bf16.vlgmr.msra.gmra.mrb[0].mxu1 %vm318_vm1, %v1009_v9  ;;  %v1012_v13 = vld [vmem:[%s1165_s8 + $0x60] sm:$0xff]   ;;  %v1005_v14 = vld [vmem:[%s1165_s8 + $0x28] sm:$0xff]   ;;  %v1006_v15 = vld [vmem:[%s1165_s8 + $0x30] sm:$0xff]   ;;  %p1024_p1 = scmp.lt.s32.totalorder %s1022_s6, %s1016_s30 }
  0x1d   : > { %938 = vmatprep.mubr.msk.bf16.mxu1 %vm318_vm1, %v1010_v10  ;;  %v1013_v16 = vld [vmem:[%s1165_s8 + $0x68] sm:$0xff]   ;;  %v1014_v17 = vld [vmem:[%s1165_s8 + $0x70] sm:$0xff]   ;;  %v1007_v18 = vld [vmem:[%s1165_s8 + $0x38] sm:$0xff]  }
  0x1e   : > { %v1015_v19 = vld [vmem:[%s1165_s8 + $0x78] sm:$0xff]   ;;  %p1025_p2 = por %p1024_p1, %p1023_p0 }
  0x20   : > { %p1026_p3 = pnand %p1025_p2, %p1019_p13 }
  0x23   : > { %923 = vmatmul.mubr.msk.bf16.gmra.mrb[4].mxu0 %vm318_vm1, %v1003_v7 }
  0x24   : > { %926 = vmatprep.mubr.msk.bf16.mxu0 %vm318_vm1, %v1004_v11  ;;  %939 = vmatmul.mubr.msk.bf16.gmra.mrb[4].mxu1 %vm318_vm1, %v1011_v12 }
  0x25   : > { %942 = vmatprep.mubr.msk.bf16.mxu1 %vm318_vm1, %v1012_v13 }
  0x2b   : > { %927 = vmatmul.mubr.msk.bf16.gmra.mrb[8].mxu0 %vm318_vm1, %v1005_v14 }
  0x2c   : > { %930 = vmatprep.mubr.msk.bf16.mxu0 %vm318_vm1, %v1006_v15  ;;  %943 = vmatmul.mubr.msk.bf16.gmra.mrb[8].mxu1 %vm318_vm1, %v1013_v16 }
  0x2d   : > { %946 = vmatprep.mubr.msk.bf16.mxu1 %vm318_vm1, %v1014_v17 }
  0x33   : > { %931 = vmatmul.mubr.msk.bf16.gmra.mrb[12].mxu0 %vm318_vm1, %v1007_v18 }
  0x34   : > { %947 = vmatmul.mubr.msk.bf16.gmra.mrb[12].mxu1 %vm318_vm1, %v1015_v19 }
  0xee   : > { %v920_v20 = vpop.f32.mrb[0].mxu0 }
  0xef   : > { %535 = vst.msk [vmem:[%s1203_s16 + $0x10] sm:$0xff] %vm532_vm2, %v920_v20  ;;  %v405_v21 = vpop.f32.mrb[1].mxu0  ;;  %v638_v25 = vmul.f32 %v920_v20, %v920_v20  ;;  %v1215_v30 = vpop.f32.mrb[0].mxu1  ;;  %v568_v31 = vsel %vm532_vm2, %v920_v20, 0.0 }
  0xf0   : > { %533 = vst.msk [vmem:[%s1203_s16] sm:$0xff] %vm532_vm2, %v405_v21  ;;  %v636_v22 = vmul.f32 %v405_v21, %v405_v21  ;;  %v921_v23 = vpop.f32.mrb[2].mxu0  ;;  %v565_v26 = vsel %vm532_vm2, %v405_v21, 0.0  ;;  %551 = vst.msk [vmem:[%s1203_s16 + $0x90] sm:$0xff] %vm532_vm2, %v1215_v30  ;;  %v1223_v35 = vpop.f32.mrb[1].mxu1 }
  0xf1   : > { %536 = vst.msk [vmem:[%s1203_s16 + $0x18] sm:$0xff] %vm532_vm2, %v921_v23  ;;  %v408_v24 = vpop.f32.mrb[3].mxu0  ;;  %v639_v33 = vmul.f32 %v921_v23, %v921_v23  ;;  %549 = vst.msk [vmem:[%s1203_s16 + $0x80] sm:$0xff] %vm532_vm2, %v1223_v35  ;;  %v1228_v38 = vpop.f32.mrb[2].mxu1  ;;  %v671_v39 = vsel %vm532_vm2, %v638_v25, 0.0  ;;  %v570_v40 = vsel %vm532_vm2, %v921_v23, 0.0 }
  0xf2   : > { %534 = vst.msk [vmem:[%s1203_s16 + $0x8] sm:$0xff] %vm532_vm2, %v408_v24  ;;  %v566_v27 = vsel %vm532_vm2, %v408_v24, 0.0  ;;  %v637_v28 = vmul.f32 %v408_v24, %v408_v24  ;;  %v668_v32 = vsel %vm532_vm2, %v636_v22, 0.0  ;;  %552 = vst.msk [vmem:[%s1203_s16 + $0x98] sm:$0xff] %vm532_vm2, %v1228_v38  ;;  %v1235_v42 = vpop.f32.mrb[3].mxu1 }
  0xf3   : > { %v567_v29 = vadd.f32 %v566_v27, %v565_v26  ;;  %550 = vst.msk [vmem:[%s1203_s16 + $0x88] sm:$0xff] %vm532_vm2, %v1235_v42  ;;  %v673_v46 = vsel %vm532_vm2, %v639_v33, 0.0 }
  0xf4   : > { %v669_v34 = vsel %vm532_vm2, %v637_v28, 0.0 }
  0xf5   : > { %v569_v36 = vadd.f32 %v568_v31, %v567_v29  ;;  %v670_v37 = vadd.f32 %v669_v34, %v668_v32 }
  0xf6   : > { %v924_v41 = vpop.f32.mrb[4].mxu0 }
  0xf7   : > { %v672_v43 = vadd.f32 %v671_v39, %v670_v37  ;;  %539 = vst.msk [vmem:[%s1203_s16 + $0x30] sm:$0xff] %vm532_vm2, %v924_v41  ;;  %v421_v44 = vpop.f32.mrb[5].mxu0  ;;  %v571_v45 = vadd.f32 %v570_v40, %v569_v36  ;;  %v642_v53 = vmul.f32 %v924_v41, %v924_v41  ;;  %v1252_v59 = vpop.f32.mrb[4].mxu1  ;;  %v576_v60 = vsel %vm532_vm2, %v924_v41, 0.0 }
  0xf8   : > { %537 = vst.msk [vmem:[%s1203_s16 + $0x20] sm:$0xff] %vm532_vm2, %v421_v44  ;;  %v572_v47 = vsel %vm532_vm2, %v421_v44, 0.0  ;;  %v640_v48 = vmul.f32 %v421_v44, %v421_v44  ;;  %v925_v49 = vpop.f32.mrb[6].mxu0  ;;  %555 = vst.msk [vmem:[%s1203_s16 + $0xb0] sm:$0xff] %vm532_vm2, %v1252_v59  ;;  %v1259_v63 = vpop.f32.mrb[5].mxu1 }
  0xf9   : > { %v573_v50 = vadd.f32 %v572_v47, %v571_v45  ;;  %v674_v51 = vadd.f32 %v673_v46, %v672_v43  ;;  %540 = vst.msk [vmem:[%s1203_s16 + $0x38] sm:$0xff] %vm532_vm2, %v925_v49  ;;  %v424_v52 = vpop.f32.mrb[7].mxu0  ;;  %v643_v61 = vmul.f32 %v925_v49, %v925_v49  ;;  %553 = vst.msk [vmem:[%s1203_s16 + $0xa0] sm:$0xff] %vm532_vm2, %v1259_v63  ;;  %v1264_v2 = vpop.f32.mrb[6].mxu1  ;;  %v679_v3 = vsel %vm532_vm2, %v642_v53, 0.0 }
  0xfa   : > { %v675_v54 = vsel %vm532_vm2, %v640_v48, 0.0  ;;  %538 = vst.msk [vmem:[%s1203_s16 + $0x28] sm:$0xff] %vm532_vm2, %v424_v52  ;;  %v574_v55 = vsel %vm532_vm2, %v424_v52, 0.0  ;;  %v641_v56 = vmul.f32 %v424_v52, %v424_v52  ;;  %v578_v4 = vsel %vm532_vm2, %v925_v49, 0.0  ;;  %556 = vst.msk [vmem:[%s1203_s16 + $0xb8] sm:$0xff] %vm532_vm2, %v1264_v2  ;;  %v1271_v6 = vpop.f32.mrb[7].mxu1 }
  0xfb   : > { %v676_v57 = vadd.f32 %v675_v54, %v674_v51  ;;  %v575_v58 = vadd.f32 %v574_v55, %v573_v50  ;;  %554 = vst.msk [vmem:[%s1203_s16 + $0xa8] sm:$0xff] %vm532_vm2, %v1271_v6  ;;  %v681_v10 = vsel %vm532_vm2, %v643_v61, 0.0 }
  0xfc   : > { %v677_v62 = vsel %vm532_vm2, %v641_v56, 0.0 }
  0xfd   : > { %v577_v0 = vadd.f32 %v576_v60, %v575_v58  ;;  %v678_v1 = vadd.f32 %v677_v62, %v676_v57  ;;  %v652_v60 = vmul.f32 %v1223_v35, %v1223_v35 }
  0xfe   : > { %v928_v5 = vpop.f32.mrb[8].mxu0 }
  0xff   : > { %v680_v7 = vadd.f32 %v679_v3, %v678_v1  ;;  %543 = vst.msk [vmem:[%s1203_s16 + $0x50] sm:$0xff] %vm532_vm2, %v928_v5  ;;  %v437_v8 = vpop.f32.mrb[9].mxu0  ;;  %v579_v9 = vadd.f32 %v578_v4, %v577_v0  ;;  %v646_v17 = vmul.f32 %v928_v5, %v928_v5  ;;  %v1288_v23 = vpop.f32.mrb[8].mxu1  ;;  %v584_v24 = vsel %vm532_vm2, %v928_v5, 0.0 }
 0x100   : > { %541 = vst.msk [vmem:[%s1203_s16 + $0x40] sm:$0xff] %vm532_vm2, %v437_v8  ;;  %v580_v11 = vsel %vm532_vm2, %v437_v8, 0.0  ;;  %v644_v12 = vmul.f32 %v437_v8, %v437_v8  ;;  %v929_v13 = vpop.f32.mrb[10].mxu0  ;;  %559 = vst.msk [vmem:[%s1203_s16 + $0xd0] sm:$0xff] %vm532_vm2, %v1288_v23  ;;  %v1295_v27 = vpop.f32.mrb[9].mxu1  ;;  %v596_v5 = vsel %vm532_vm2, %v1223_v35, 0.0  ;;  %v653_v35 = vmul.f32 %v1235_v42, %v1235_v42 }
 0x101   : > { %v581_v14 = vadd.f32 %v580_v11, %v579_v9  ;;  %v682_v15 = vadd.f32 %v681_v10, %v680_v7  ;;  %544 = vst.msk [vmem:[%s1203_s16 + $0x58] sm:$0xff] %vm532_vm2, %v929_v13  ;;  %v440_v16 = vpop.f32.mrb[11].mxu0  ;;  %v647_v25 = vmul.f32 %v929_v13, %v929_v13  ;;  %557 = vst.msk [vmem:[%s1203_s16 + $0xc0] sm:$0xff] %vm532_vm2, %v1295_v27  ;;  %v1300_v31 = vpop.f32.mrb[10].mxu1  ;;  %v687_v32 = vsel %vm532_vm2, %v646_v17, 0.0 }
 0x102   : > { %v683_v18 = vsel %vm532_vm2, %v644_v12, 0.0  ;;  %542 = vst.msk [vmem:[%s1203_s16 + $0x48] sm:$0xff] %vm532_vm2, %v440_v16  ;;  %v582_v19 = vsel %vm532_vm2, %v440_v16, 0.0  ;;  %v645_v20 = vmul.f32 %v440_v16, %v440_v16  ;;  %v586_v33 = vsel %vm532_vm2, %v929_v13, 0.0  ;;  %560 = vst.msk [vmem:[%s1203_s16 + $0xd8] sm:$0xff] %vm532_vm2, %v1300_v31  ;;  %v1307_v36 = vpop.f32.mrb[11].mxu1 }
 0x103   : > { %v684_v21 = vadd.f32 %v683_v18, %v682_v15  ;;  %v583_v22 = vadd.f32 %v582_v19, %v581_v14  ;;  %558 = vst.msk [vmem:[%s1203_s16 + $0xc8] sm:$0xff] %vm532_vm2, %v1307_v36  ;;  %v689_v41 = vsel %vm532_vm2, %v647_v25, 0.0  ;;  %v699_v12 = vsel %vm532_vm2, %v652_v60, 0.0 }
 0x104   : > { %v685_v26 = vsel %vm532_vm2, %v645_v20, 0.0  ;;  %v654_v16 = vmul.f32 %v1215_v30, %v1215_v30  ;;  %v598_v17 = vsel %vm532_vm2, %v1235_v42, 0.0  ;;  %v600_v20 = vsel %vm532_vm2, %v1215_v30, 0.0 }
 0x105   : > { %v585_v28 = vadd.f32 %v584_v24, %v583_v22  ;;  %v686_v29 = vadd.f32 %v685_v26, %v684_v21  ;;  %v655_v21 = vmul.f32 %v1228_v38, %v1228_v38  ;;  %v701_v22 = vsel %vm532_vm2, %v653_v35, 0.0 }
 0x106   : > { %v932_v34 = vpop.f32.mrb[12].mxu0  ;;  %v656_v24 = vmul.f32 %v1259_v63, %v1259_v63  ;;  %v602_v42 = vsel %vm532_vm2, %v1228_v38, 0.0  ;;  %v606_v38 = vsel %vm532_vm2, %v1271_v6, 0.0  ;;  %v662_v60 = vmul.f32 %v1288_v23, %v1288_v23 }
 0x107   : > { %v688_v37 = vadd.f32 %v687_v32, %v686_v29  ;;  %547 = vst.msk [vmem:[%s1203_s16 + $0x70] sm:$0xff] %vm532_vm2, %v932_v34  ;;  %v453_v39 = vpop.f32.mrb[13].mxu0  ;;  %v587_v40 = vadd.f32 %v586_v33, %v585_v28  ;;  %v650_v49 = vmul.f32 %v932_v34, %v932_v34  ;;  %v1324_v55 = vpop.f32.mrb[12].mxu1  ;;  %v592_v56 = vsel %vm532_vm2, %v932_v34, 0.0 }
 0x108   : > { %545 = vst.msk [vmem:[%s1203_s16 + $0x60] sm:$0xff] %vm532_vm2, %v453_v39  ;;  %v588_v43 = vsel %vm532_vm2, %v453_v39, 0.0  ;;  %v648_v44 = vmul.f32 %v453_v39, %v453_v39  ;;  %v933_v45 = vpop.f32.mrb[14].mxu0  ;;  %563 = vst.msk [vmem:[%s1203_s16 + $0xf0] sm:$0xff] %vm532_vm2, %v1324_v55  ;;  %v1333_v61 = vpop.f32.mrb[13].mxu1  ;;  %v703_v28 = vsel %vm532_vm2, %v654_v16, 0.0 }
 0x109   : > { %v589_v46 = vadd.f32 %v588_v43, %v587_v40  ;;  %v690_v47 = vadd.f32 %v689_v41, %v688_v37  ;;  %548 = vst.msk [vmem:[%s1203_s16 + $0x78] sm:$0xff] %vm532_vm2, %v933_v45  ;;  %v456_v48 = vpop.f32.mrb[15].mxu0  ;;  %v651_v57 = vmul.f32 %v933_v45, %v933_v45  ;;  %561 = vst.msk [vmem:[%s1203_s16 + $0xe0] sm:$0xff] %vm532_vm2, %v1333_v61  ;;  %v1338_v1 = vpop.f32.mrb[14].mxu1  ;;  %v695_v3 = vsel %vm532_vm2, %v650_v49, 0.0 }
 0x10a   : > { %v691_v50 = vsel %vm532_vm2, %v648_v44, 0.0  ;;  %546 = vst.msk [vmem:[%s1203_s16 + $0x68] sm:$0xff] %vm532_vm2, %v456_v48  ;;  %v590_v51 = vsel %vm532_vm2, %v456_v48, 0.0  ;;  %v649_v52 = vmul.f32 %v456_v48, %v456_v48  ;;  %v594_v4 = vsel %vm532_vm2, %v933_v45, 0.0  ;;  %564 = vst.msk [vmem:[%s1203_s16 + $0xf8] sm:$0xff] %vm532_vm2, %v1338_v1  ;;  %v1349_v8 = vpop.f32.mrb[15].mxu1 }
 0x10b   : > { %v692_v53 = vadd.f32 %v691_v50, %v690_v47  ;;  %v591_v54 = vadd.f32 %v590_v51, %v589_v46  ;;  %v667_v7 = vmul.f32 %v1338_v1, %v1338_v1  ;;  %562 = vst.msk [vmem:[%s1203_s16 + $0xe8] sm:$0xff] %vm532_vm2, %v1349_v8  ;;  %v697_v11 = vsel %vm532_vm2, %v651_v57, 0.0 }
 0x10c   : > { %v693_v58 = vsel %vm532_vm2, %v649_v52, 0.0  ;;  %v604_v29 = vsel %vm532_vm2, %v1259_v63, 0.0  ;;  %v705_v33 = vsel %vm532_vm2, %v655_v21, 0.0  ;;  %v707_v34 = vsel %vm532_vm2, %v656_v24, 0.0 }
 0x10d   : > { %v593_v62 = vadd.f32 %v592_v56, %v591_v54  ;;  %v694_v0 = vadd.f32 %v693_v58, %v692_v53  ;;  %v1359_v13 = vsel %vm532_vm2, %v667_v7, 0.0  ;;  %v657_v37 = vmul.f32 %v1271_v6, %v1271_v6 }
 0x10e   : > { %v658_v41 = vmul.f32 %v1252_v59, %v1252_v59  ;;  %v608_v63 = vsel %vm532_vm2, %v1252_v59, 0.0  ;;  %v659_v45 = vmul.f32 %v1264_v2, %v1264_v2  ;;  %v660_v47 = vmul.f32 %v1295_v27, %v1295_v27 }
 0x10f   : > { %v696_v9 = vadd.f32 %v695_v3, %v694_v0  ;;  %v595_v10 = vadd.f32 %v594_v4, %v593_v62  ;;  %v709_v46 = vsel %vm532_vm2, %v657_v37, 0.0  ;;  %v610_v6 = vsel %vm532_vm2, %v1264_v2, 0.0 }
 0x110   : > { %v711_v50 = vsel %vm532_vm2, %v658_v41, 0.0  ;;  %v612_v51 = vsel %vm532_vm2, %v1295_v27, 0.0  ;;  %v713_v53 = vsel %vm532_vm2, %v659_v45, 0.0  ;;  %v715_v54 = vsel %vm532_vm2, %v660_v47, 0.0 }
 0x111   : > { %v597_v14 = vadd.f32 %v596_v5, %v595_v10  ;;  %v698_v15 = vadd.f32 %v697_v11, %v696_v9  ;;  %v661_v56 = vmul.f32 %v1307_v36, %v1307_v36  ;;  %v614_v2 = vsel %vm532_vm2, %v1307_v36, 0.0 }
 0x112   : > { %v616_v27 = vsel %vm532_vm2, %v1288_v23, 0.0  ;;  %v663_v3 = vmul.f32 %v1300_v31, %v1300_v31  ;;  %v664_v5 = vmul.f32 %v1333_v61, %v1333_v61  ;;  %v719_v10 = vsel %vm532_vm2, %v662_v60, 0.0 }
 0x113   : > { %v700_v18 = vadd.f32 %v699_v12, %v698_v15  ;;  %v599_v19 = vadd.f32 %v598_v17, %v597_v14  ;;  %v717_v4 = vsel %vm532_vm2, %v661_v56, 0.0  ;;  %v618_v36 = vsel %vm532_vm2, %v1300_v31, 0.0 }
 0x114   : > { %v620_v11 = vsel %vm532_vm2, %v1333_v61, 0.0  ;;  %v721_v35 = vsel %vm532_vm2, %v663_v3, 0.0  ;;  %v723_v14 = vsel %vm532_vm2, %v664_v5, 0.0  ;;  %v665_v15 = vmul.f32 %v1349_v8, %v1349_v8 }
 0x115   : > { %v601_v25 = vadd.f32 %v600_v20, %v599_v19  ;;  %v702_v26 = vadd.f32 %v701_v22, %v700_v18  ;;  %v666_v18 = vmul.f32 %v1324_v55, %v1324_v55  ;;  %v622_v31 = vsel %vm532_vm2, %v1349_v8, 0.0 }
 0x116   : > { %v624_v20 = vsel %vm532_vm2, %v1324_v55, 0.0  ;;  %v725_v21 = vsel %vm532_vm2, %v665_v15, 0.0 }
 0x117   : > { %v704_v32 = vadd.f32 %v703_v28, %v702_v26  ;;  %v603_v30 = vadd.f32 %v602_v42, %v601_v25  ;;  %v727_v25 = vsel %vm532_vm2, %v666_v18, 0.0  ;;  %v626_v26 = vsel %vm532_vm2, %v1338_v1, 0.0 }
 0x119   : > { %v605_v39 = vadd.f32 %v604_v29, %v603_v30  ;;  %v706_v40 = vadd.f32 %v705_v33, %v704_v32 }
 0x11b   : > { %v708_v43 = vadd.f32 %v707_v34, %v706_v40  ;;  %v607_v44 = vadd.f32 %v606_v38, %v605_v39 }
 0x11d   : > { %v609_v48 = vadd.f32 %v608_v63, %v607_v44  ;;  %v710_v49 = vadd.f32 %v709_v46, %v708_v43 }
 0x11f   : > { %v712_v52 = vadd.f32 %v711_v50, %v710_v49  ;;  %v611_v59 = vadd.f32 %v610_v6, %v609_v48 }
 0x121   : > { %v613_v57 = vadd.f32 %v612_v51, %v611_v59  ;;  %v714_v58 = vadd.f32 %v713_v53, %v712_v52 }
 0x123   : > { %v716_v62 = vadd.f32 %v715_v54, %v714_v58  ;;  %v615_v0 = vadd.f32 %v614_v2, %v613_v57 }
 0x125   : > { %v617_v7 = vadd.f32 %v616_v27, %v615_v0  ;;  %v718_v9 = vadd.f32 %v717_v4, %v716_v62 }
 0x127   : > { %v720_v12 = vadd.f32 %v719_v10, %v718_v9  ;;  %v619_v23 = vadd.f32 %v618_v36, %v617_v7 }
 0x129   : > { %v621_v16 = vadd.f32 %v620_v11, %v619_v23  ;;  %v722_v17 = vadd.f32 %v721_v35, %v720_v12 }
 0x12b   : > { %v724_v19 = vadd.f32 %v723_v14, %v722_v17  ;;  %v623_v61 = vadd.f32 %v622_v31, %v621_v16 }
 0x12d   : > { %v625_v22 = vadd.f32 %v624_v20, %v623_v61  ;;  %v726_v24 = vadd.f32 %v725_v21, %v724_v19 }
 0x12f   : > { %v627_v28 = vadd.f32 %v626_v26, %v625_v22  ;;  %v728_v42 = vadd.f32 %v727_v25, %v726_v24 }
 0x131   : > { %v628_v29 = vrot.slane %v627_v28, 4  ;;  %v730_v32 = vadd.f32 %v1359_v13, %v728_v42 }
 0x133   : > { %v629_v8 = vadd.f32 %v628_v29, %v627_v28  ;;  %v731_v30 = vrot.slane %v730_v32, 4 }
 0x135   : > { %v630_v55 = vrot.slane %v629_v8, 2  ;;  %v732_v33 = vadd.f32 %v731_v30, %v730_v32 }
 0x137   : > { %v631_v34 = vadd.f32 %v630_v55, %v629_v8  ;;  %v733_v37 = vrot.slane %v732_v33, 2 }
 0x139   : > { %v632_v39 = vrot.slane %v631_v34, 1  ;;  %v734_v40 = vadd.f32 %v733_v37, %v732_v33 }
 0x13b   : > { %v633_v1 = vadd.f32 %v632_v39, %v631_v34  ;;  %v735_v41 = vrot.slane %v734_v40, 1 }
 0x13d   : > { %635 = vst.msk [vmem:[%s172_s20] sm:$0x1] %vm634_vm3, %v633_v1  ;;  %v736_v38 = vadd.f32 %v735_v41, %v734_v40 }
 0x13f   : > { %737 = vst.msk [vmem:[%s172_s20 + $0x1] sm:$0x1] %vm634_vm3, %v736_v38 }
 0x140   : > { %1029 = shalt.err (!%p1026_p3)
}
 0x141   : > { %s1030_s28 = scalar_lea.hbm %s1437_s27, 32  ;;  %s1034_s9 = scalar_lea.hbm %s1482_s3, 64 }
 0x142   : > { %p1031_p4 = scmp.ne.s32.totalorder %s1437_s27, %s1030_s28  ;;  %p1035_p9 = scmp.lt.u32.totalorder %s1437_s27, %s1482_s3 }
 0x143   : > { %p1036_p10 = scmp.lt.u32.totalorder %s1034_s9, %s1030_s28  ;;  %p1038_p12 = scmp.lt.u32.totalorder %s1030_s28, %s1437_s27 }
 0x144   : > { %p1032_p7 = pnand %p1031_p4, %p1136_p5 }
 0x145   : > { %p1037_p11 = por %p1036_p10, %p1035_p9 }
 0x146   : > { %p1033_p8 = pneg %p1032_p7 }
 0x147   : > { %p1039_p13 = por %p1038_p12, %p1037_p11 }
 0x149   : > { %p1040_p0 = pnand %p1039_p13, %p1033_p8 }
 0x14b   : > { %1043 = shalt.err (!%p1040_p0)
}
 0x14c   : > { %958 = dma.vmem_to_hbm [thread:$0]  (%p1136_p5), %s1439_s24, 32, %s1437_s27, %s744_s29  }
 0x14d PF: > { %p964_p1 = scmp.ge.s32.totalorder %s1078_s15, 2  ;;  %s781_s16 = sand.u32 1, %s1066_s12  }
 0x14e   : > { %s782_s17 = scalar_lea.sflag [#allocation3], %s781_s16 }
 0x14f   : > { %p961_p2 = pnand %p964_p1, %p1140_p6 }
 0x151   : > { %1061 = dma.done.wait (!%p961_p2), %s782_s17, 32  }
 0x152   : > { %1063 = vsyncadd (!%p961_p2), %s782_s17, 4294967264  ;;  %p14_p3 = scmp.ge.s32.totalorder %s1124_s18, 4   ;;  %s1485_s12 = smov %s1070_s13 }
 0x153   : > { %s1486_s13 = smov %s1074_s14  ;;  %s1487_s14 = smov %s1134_s21 }
 0x154   : > { %s1488_s15 = smov %s1124_s18  ;;  %16 = sbr.rel (!%p14_p3) target bundleno = 3 (0x3), region = 75 }
 0x15b   :  { %787 = vsyncpa [#allocation3], 1 }
 0x15c   :  { %789 = vsyncpa [#allocation3 + $0x1], 1 }

</bundles_post_ra>
